<compile_context>
chip_gen: v7x
topology: tpu7x:2x2x1
jax: 0.10.0
libtpu: 0.0.40
codegen_flags: <defaults>
</compile_context>

<pallas_src>
import functools

import numpy as np
import jax
import jax.numpy as jnp
from jax.experimental import pallas as pl
from jax.experimental.pallas import tpu as pltpu


# ----------------------------------------------------------------------------
# Banded-weight packing (host side; call ONCE outside the jitted forward).
#
# (3, 3, Cin, Cout) HWIO ->  (3*W*Cin, W*Cout)
# Band dh (stacked along contraction rows) multiplies activation row x[h+dh-1];
# output column block wo reads input column blocks wo-1, wo, wo+1, with the
# out-of-range (image-boundary) contributions simply left as zeros in the band.
# ----------------------------------------------------------------------------
def pack_banded_weight(w_hwio, W, dtype=jnp.bfloat16):
    kh, kw, Cin, Cout = w_hwio.shape
    w = np.asarray(w_hwio, np.float32)
    B = np.zeros((kh, W * Cin, W * Cout), np.float32)
    for wo in range(W):
        for dw in range(kw):
            wi = wo + dw - 1
            if 0 <= wi < W:
                B[:, wi * Cin:(wi + 1) * Cin, wo * Cout:(wo + 1) * Cout] = w[:, dw]
    return jnp.asarray(B.reshape(kh * W * Cin, W * Cout), dtype)


# ----------------------------------------------------------------------------
# Pallas kernel 1: 3x3 "same" conv as ONE banded MXU matmul per batch element,
# optional fused input affine+ReLU (folded BN of the previous layer), bias add,
# and lane-dense per-lane partial BN stats as a second output.
#
# Layouts (all lane-dense; last dims are multiples of 128 at these shapes):
#   x_ref:      (1, H, W*Cin)       activation tile (compute dtype, e.g. bf16)
#   w_ref:      (3*W*Cin, W*Cout)   banded weights (boundary zeros baked in)
#   b_ref:      (1, W*Cout)         conv bias tiled over W (f32)
#   s_ref/t_ref:(1, W*Cin)          folded BN affine of the *input* (f32)
#   o_ref:      (1, H, W*Cout)      conv output (compute dtype)
#   stats_ref:  (1, 2, W*Cout)      [row-sum, row-sum-of-squares] of the f32 acc
# ----------------------------------------------------------------------------
def _conv3x3_kernel(*refs, H, W, Cin, Cout, fuse_input_act):
    if fuse_input_act:
        x_ref, w_ref, b_ref, s_ref, t_ref, o_ref, stats_ref = refs
    else:
        x_ref, w_ref, b_ref, o_ref, stats_ref = refs

    cdt = x_ref.dtype
    x = x_ref[0]                                                # (H, W*Cin)
    if fuse_input_act:
        # Folded bn+relu of the previous layer, applied in f32 on the VPU.
        x = jnp.maximum(x.astype(jnp.float32) * s_ref[...] + t_ref[...], 0.0)
        x = x.astype(cdt)

    # Row halo in-register: band dh multiplies x[h + dh - 1] (zero out of range).
    zrow = jnp.zeros((1, W * Cin), cdt)
    x_dn = jnp.concatenate([zrow, x[:H - 1]], axis=0)           # x[h-1]
    x_up = jnp.concatenate([x[1:], zrow], axis=0)               # x[h+1]
    xcat = jnp.concatenate([x_dn, x, x_up], axis=1)             # (H, 3*W*Cin)

    # Single fused banded matmul on the MXU; column halo is baked into w_ref.
    acc = jnp.dot(xcat, w_ref[...], preferred_element_type=jnp.float32)
    acc = acc + b_ref[...]                                      # conv bias (f32)

    o_ref[0] = acc.astype(o_ref.dtype)                          # full 128-lane stores

    # Lane-dense partial BN stats from the f32 accumulator (pre-downcast).
    cs = jnp.sum(acc, axis=0, keepdims=True)                    # (1, W*Cout)
    cs2 = jnp.sum(acc * acc, axis=0, keepdims=True)             # (1, W*Cout)
    stats_ref[0] = jnp.concatenate([cs, cs2], axis=0)           # (2, W*Cout)


def conv3x3(x_flat, w_banded, bias, in_scale=None, in_bias=None, *,
            H, W, Cin, Cout):
    """x_flat: (N, H, W*Cin). Returns (y: (N, H, W*Cout), stats: (N, 2, W*Cout))."""
    N = x_flat.shape[0]
    fuse = in_scale is not None
    kernel = functools.partial(_conv3x3_kernel, H=H, W=W, Cin=Cin, Cout=Cout,
                               fuse_input_act=fuse)
    in_specs = [
        pl.BlockSpec((1, H, W * Cin), lambda n: (n, 0, 0)),
        pl.BlockSpec((3 * W * Cin, W * Cout), lambda n: (0, 0)),
        pl.BlockSpec((1, W * Cout), lambda n: (0, 0)),
    ]
    args = [x_flat, w_banded,
            jnp.tile(bias, W).reshape(1, W * Cout).astype(jnp.float32)]
    if fuse:
        in_specs += [pl.BlockSpec((1, W * Cin), lambda n: (0, 0)),
                     pl.BlockSpec((1, W * Cin), lambda n: (0, 0))]
        args += [jnp.tile(in_scale, W).reshape(1, W * Cin).astype(jnp.float32),
                 jnp.tile(in_bias, W).reshape(1, W * Cin).astype(jnp.float32)]
    return pl.pallas_call(
        kernel,
        out_shape=(jax.ShapeDtypeStruct((N, H, W * Cout), x_flat.dtype),
                   jax.ShapeDtypeStruct((N, 2, W * Cout), jnp.float32)),
        grid=(N,),
        in_specs=in_specs,
        out_specs=(pl.BlockSpec((1, H, W * Cout), lambda n: (n, 0, 0)),
                   pl.BlockSpec((1, 2, W * Cout), lambda n: (n, 0, 0))),
        compiler_params=pltpu.CompilerParams(
            dimension_semantics=("parallel",)),
    )(*args)


# ----------------------------------------------------------------------------
# Pallas kernel 2: final fused per-channel affine (folded BN2) + ReLU.
# One grid step over the whole lane-dense (N*H, W*C) slab (toy sizes fit VMEM).
# ----------------------------------------------------------------------------
def _bn_relu_kernel(y_ref, s_ref, t_ref, o_ref):
    o_ref[...] = jnp.maximum(
        y_ref[...].astype(jnp.float32) * s_ref[...] + t_ref[...], 0.0)


def bn_relu(y_2d, scale, bias, *, W, C):
    M = y_2d.shape[0]
    st = jnp.tile(scale, W).reshape(1, W * C).astype(jnp.float32)
    tt = jnp.tile(bias, W).reshape(1, W * C).astype(jnp.float32)
    return pl.pallas_call(
        _bn_relu_kernel,
        out_shape=jax.ShapeDtypeStruct((M, W * C), jnp.float32),
        grid=(1,),
        in_specs=[pl.BlockSpec((M, W * C), lambda i: (0, 0)),
                  pl.BlockSpec((1, W * C), lambda i: (0, 0)),
                  pl.BlockSpec((1, W * C), lambda i: (0, 0))],
        out_specs=pl.BlockSpec((M, W * C), lambda i: (0, 0)),
        compiler_params=pltpu.CompilerParams(
            dimension_semantics=("parallel",)),
    )(y_2d, st, tt)


# ----------------------------------------------------------------------------
# Plain-JAX glue: bilinear upsample (align_corners=True), concat, BN folding.
# ----------------------------------------------------------------------------
def bilinear_align_corners(x_nhwc, out_h, out_w):
    # Matches F.interpolate(mode='bilinear', align_corners=True).
    N, H, W, C = x_nhwc.shape

    def src_coords(out_size, in_size):
        if out_size == 1:
            return jnp.zeros((out_size,), jnp.float32)
        return jnp.arange(out_size, dtype=jnp.float32) * ((in_size - 1) / (out_size - 1))

    hs = src_coords(out_h, H)
    ws = src_coords(out_w, W)
    h0 = jnp.floor(hs).astype(jnp.int32)
    w0 = jnp.floor(ws).astype(jnp.int32)
    h1 = jnp.minimum(h0 + 1, H - 1)
    w1 = jnp.minimum(w0 + 1, W - 1)
    fh = (hs - h0.astype(jnp.float32))[None, :, None, None]
    fw = (ws - w0.astype(jnp.float32))[None, None, :, None]

    xh0 = x_nhwc[:, h0]
    xh1 = x_nhwc[:, h1]
    top = xh0[:, :, w0] * (1.0 - fw) + xh0[:, :, w1] * fw
    bot = xh1[:, :, w0] * (1.0 - fw) + xh1[:, :, w1] * fw
    return top * (1.0 - fh) + bot * fh


def _bn_affine_from_partials(stats, gamma, beta, count, W, Cout, eps=1e-5):
    # stats: (N, 2, W*Cout) per-block per-lane [sum, sum_sq] -> training-mode BN.
    # NOTE: single-pass E[x^2]-E[x]^2 (kept in f32 end-to-end); fine for
    # conv-then-BN activations whose means are small relative to their std.
    tot = jnp.sum(stats.reshape(stats.shape[0], 2, W, Cout), axis=(0, 2))  # (2, Cout)
    mean = tot[0] / count
    var = jnp.maximum(tot[1] / count - mean * mean, 0.0)   # biased, as torch BN training
    scale = gamma * jax.lax.rsqrt(var + eps)
    bias = beta - mean * scale
    return scale, bias


def decoder_block_forward(x_nchw, skip_nchw, p, banded, eps=1e-5,
                          compute_dtype=jnp.bfloat16):
    """DecoderBlock forward with training-mode (batch-statistics) BatchNorm."""
    x = jnp.transpose(x_nchw, (0, 2, 3, 1))            # NCHW -> NHWC
    if skip_nchw is not None:
        skip = jnp.transpose(skip_nchw, (0, 2, 3, 1))
        x = bilinear_align_corners(x, skip.shape[1], skip.shape[2])
        x = jnp.concatenate([x, skip], axis=-1)

    N, H, W, Cin1 = x.shape
    Cout = p["g1"].shape[0]
    count = N * H * W

    x_flat = x.astype(compute_dtype).reshape(N, H, W * Cin1)

    # Layer 1: conv1 + bias; per-channel partial stats emitted alongside.
    y1, st1 = conv3x3(x_flat, banded["wb1"], p["b1"], H=H, W=W, Cin=Cin1, Cout=Cout)
    s1, t1 = _bn_affine_from_partials(st1, p["g1"], p["be1"], count, W, Cout, eps)

    # Layer 2: bn1+relu fused into conv2's input path.
    y2, st2 = conv3x3(y1, banded["wb2"], p["b2"], in_scale=s1, in_bias=t1,
                      H=H, W=W, Cin=Cout, Cout=Cout)
    s2, t2 = _bn_affine_from_partials(st2, p["g2"], p["be2"], count, W, Cout, eps)

    # Final bn2 + relu as a single lane-dense grid step.
    out_flat = bn_relu(y2.reshape(N * H, W * Cout), s2, t2, W=W, C=Cout)

    return jnp.transpose(out_flat.reshape(N, H, W, Cout), (0, 3, 1, 2))


# ----------------------------------------------------------------------------
# Pure-JAX reference (f32, HIGHEST precision) for validation.
# ----------------------------------------------------------------------------
def _bn_train_affine(y_nhwc, gamma, beta, eps=1e-5):
    mean = jnp.mean(y_nhwc, axis=(0, 1, 2))
    var = jnp.var(y_nhwc, axis=(0, 1, 2))               # biased
    scale = gamma * jax.lax.rsqrt(var + eps)
    bias = beta - mean * scale
    return scale, bias


def decoder_block_reference(x_nchw, skip_nchw, p):
    x = jnp.transpose(x_nchw, (0, 2, 3, 1))
    skip = jnp.transpose(skip_nchw, (0, 2, 3, 1))
    x = bilinear_align_corners(x, skip.shape[1], skip.shape[2])
    x = jnp.concatenate([x, skip], axis=-1)

    def conv(z, w, b):
        return jax.lax.conv_general_dilated(
            z, w, (1, 1), "SAME",
            dimension_numbers=("NHWC", "HWIO", "NHWC"),
            precision=jax.lax.Precision.HIGHEST) + b

    def bnrelu(z, g, be):
        s, t = _bn_train_affine(z, g, be)
        return jnp.maximum(z * s + t, 0.0)

    y = bnrelu(conv(x, p["w1"], p["b1"]), p["g1"], p["be1"])
    y = bnrelu(conv(y, p["w2"], p["b2"]), p["g2"], p["be2"])
    return jnp.transpose(y, (0, 3, 1, 2))


# ----------------------------------------------------------------------------
if __name__ == "__main__":
    # Module config: in_channels=4, skip_channels=4, out_channels=8
    N, IN_C, SKIP_C, OUT_C = 2, 4, 4, 8
    H_IN, W_IN = 8, 8            # low-res decoder input
    H_SK, W_SK = 16, 16          # skip connection spatial size

    key = jax.random.PRNGKey(0)
    keys = jax.random.split(key, 10)

    x = jax.random.normal(keys[0], (N, IN_C, H_IN, W_IN), jnp.float32)
    skip = jax.random.normal(keys[1], (N, SKIP_C, H_SK, W_SK), jnp.float32)

    cin1 = IN_C + SKIP_C
    params = {
        # conv weights in HWIO layout (PyTorch OIHW transposed)
        "w1": 0.1 * jax.random.normal(keys[2], (3, 3, cin1, OUT_C), jnp.float32),
        "b1": 0.1 * jax.random.normal(keys[3], (OUT_C,), jnp.float32),
        "g1": 1.0 + 0.1 * jax.random.normal(keys[4], (OUT_C,), jnp.float32),
        "be1": 0.1 * jax.random.normal(keys[5], (OUT_C,), jnp.float32),
        "w2": 0.1 * jax.random.normal(keys[6], (3, 3, OUT_C, OUT_C), jnp.float32),
        "b2": 0.1 * jax.random.normal(keys[7], (OUT_C,), jnp.float32),
        "g2": 1.0 + 0.1 * jax.random.normal(keys[8], (OUT_C,), jnp.float32),
        "be2": 0.1 * jax.random.normal(keys[9], (OUT_C,), jnp.float32),
    }

    ref = jax.block_until_ready(decoder_block_reference(x, skip, params))

    # --- f32 path: shows the banded-matmul algorithm is exact (tight tolerance).
    banded_f32 = {"wb1": pack_banded_weight(params["w1"], W_SK, jnp.float32),
                  "wb2": pack_banded_weight(params["w2"], W_SK, jnp.float32)}
    fwd_f32 = jax.jit(functools.partial(decoder_block_forward,
                                        compute_dtype=jnp.float32))
    out_f32 = jax.block_until_ready(fwd_f32(x, skip, params, banded_f32))
    assert out_f32.shape == (N, OUT_C, H_SK, W_SK), out_f32.shape
    err_f32 = float(jnp.max(jnp.abs(out_f32 - ref)))
    assert err_f32 < 1e-3, f"f32 mismatch vs reference: {err_f32}"

    # --- bf16 path: native MXU dtype (production config); bf16-appropriate tol.
    banded_bf16 = {"wb1": pack_banded_weight(params["w1"], W_SK, jnp.bfloat16),
                   "wb2": pack_banded_weight(params["w2"], W_SK, jnp.bfloat16)}
    fwd_bf16 = jax.jit(functools.partial(decoder_block_forward,
                                         compute_dtype=jnp.bfloat16))
    out_bf16 = jax.block_until_ready(fwd_bf16(x, skip, params, banded_bf16))
    assert out_bf16.shape == (N, OUT_C, H_SK, W_SK), out_bf16.shape
    err_bf16 = float(jnp.max(jnp.abs(out_bf16 - ref)))
    assert err_bf16 < 7.5e-2, f"bf16 mismatch vs reference: {err_bf16}"

    print("KERNEL_OK")
</pallas_src>

<mosaic_0001>
module attributes {stable_mosaic.version = 11 : i64} {
  func.func @_conv3x3_kernel(%arg0: i32, %arg1: memref<1x16x128xf32, #tpu.memory_space<vmem>>, %arg2: memref<384x128xf32, #tpu.memory_space<vmem>>, %arg3: memref<1x128xf32, #tpu.memory_space<vmem>>, %arg4: memref<1x16x128xf32, #tpu.memory_space<vmem>>, %arg5: memref<1x2x128xf32, #tpu.memory_space<vmem>>) attributes {dimension_semantics = [#tpu.dimension_semantics<parallel>], iteration_bounds = array<i64: 2>, scalar_prefetch = 0 : i64, scratch_operands = 0 : i64, tpu.core_type = #tpu.core_type<tc>, window_params = [{transform_indices = @transform_0, window_bounds = array<i64: 1, 16, 128>}, {pipeline_mode = #tpu.pipeline_mode<synchronous>, transform_indices = @transform_1, window_bounds = array<i64: 384, 128>}, {pipeline_mode = #tpu.pipeline_mode<synchronous>, transform_indices = @transform_2, window_bounds = array<i64: 1, 128>}, {transform_indices = @transform_3, window_bounds = array<i64: 1, 16, 128>}, {transform_indices = @transform_4, window_bounds = array<i64: 1, 2, 128>}]} {
    %c0 = arith.constant 0 : index
    %c0_0 = arith.constant 0 : index
    %c0_1 = arith.constant 0 : index
    %0 = vector.load %arg1[%c0, %c0_0, %c0_1] : memref<1x16x128xf32, #tpu.memory_space<vmem>>, vector<1x16x128xf32>
    %1 = vector.shape_cast %0 : vector<1x16x128xf32> to vector<16x128xf32>
    %cst = arith.constant 0.000000e+00 : f32
    %2 = vector.broadcast %cst : f32 to vector<1x128xf32>
    %3 = vector.extract_strided_slice %1 {offsets = [0, 0], sizes = [15, 128], strides = [1, 1]} : vector<16x128xf32> to vector<15x128xf32>
    %4 = tpu.concatenate %2, %3 in 0 : vector<1x128xf32>, vector<15x128xf32> -> vector<16x128xf32>
    %5 = vector.extract_strided_slice %1 {offsets = [1, 0], sizes = [15, 128], strides = [1, 1]} : vector<16x128xf32> to vector<15x128xf32>
    %6 = tpu.concatenate %5, %2 in 0 : vector<15x128xf32>, vector<1x128xf32> -> vector<16x128xf32>
    %7 = tpu.concatenate %4, %1, %6 in 1 : vector<16x128xf32>, vector<16x128xf32>, vector<16x128xf32> -> vector<16x384xf32>
    %c0_2 = arith.constant 0 : index
    %c0_3 = arith.constant 0 : index
    %8 = vector.load %arg2[%c0_2, %c0_3] : memref<384x128xf32, #tpu.memory_space<vmem>>, vector<384x128xf32>
    %cst_4 = arith.constant dense<0.000000e+00> : vector<16x128xf32>
    %9 = tpu.matmul %7, %8, %cst_4 {dimension_numbers = #tpu.dot_dimension_numbers<[1], [0], [0], [1], [0, 0, 1, 1], [], []>} : vector<16x384xf32>, vector<384x128xf32>, vector<16x128xf32> -> vector<16x128xf32>
    %c0_5 = arith.constant 0 : index
    %c0_6 = arith.constant 0 : index
    %10 = vector.load %arg3[%c0_5, %c0_6] : memref<1x128xf32, #tpu.memory_space<vmem>>, vector<1x128xf32>
    %11 = vector.broadcast %10 : vector<1x128xf32> to vector<16x128xf32>
    %12 = arith.addf %9, %11 : vector<16x128xf32>
    %c0_7 = arith.constant 0 : index
    %c0_8 = arith.constant 0 : index
    %c0_9 = arith.constant 0 : index
    %13 = vector.load %arg4[%c0_7, %c0_8, %c0_9] : memref<1x16x128xf32, #tpu.memory_space<vmem>>, vector<1x16x128xf32>
    %14 = vector.shape_cast %13 : vector<1x16x128xf32> to vector<16x128xf32>
    %15 = vector.shape_cast %12 : vector<16x128xf32> to vector<1x16x128xf32>
    tpu.vector_store %arg4[%c0_7, %c0_8, %c0_9], %15 {strides = array<i32>} : memref<1x16x128xf32, #tpu.memory_space<vmem>>, vector<1x16x128xf32>,
    %cst_10 = arith.constant dense<0.000000e+00> : vector<128xf32>
    %16 = vector.multi_reduction <add>, %12, %cst_10 [0] : vector<16x128xf32> to vector<128xf32>
    %17 = vector.shape_cast %16 : vector<128xf32> to vector<1x128xf32>
    %18 = arith.mulf %12, %12 : vector<16x128xf32>
    %cst_11 = arith.constant dense<0.000000e+00> : vector<128xf32>
    %19 = vector.multi_reduction <add>, %18, %cst_11 [0] : vector<16x128xf32> to vector<128xf32>
    %20 = vector.shape_cast %19 : vector<128xf32> to vector<1x128xf32>
    %21 = tpu.concatenate %17, %20 in 0 : vector<1x128xf32>, vector<1x128xf32> -> vector<2x128xf32>
    %c0_12 = arith.constant 0 : index
    %c0_13 = arith.constant 0 : index
    %c0_14 = arith.constant 0 : index
    %22 = vector.load %arg5[%c0_12, %c0_13, %c0_14] : memref<1x2x128xf32, #tpu.memory_space<vmem>>, vector<1x2x128xf32>
    %23 = vector.shape_cast %22 : vector<1x2x128xf32> to vector<2x128xf32>
    %24 = vector.shape_cast %21 : vector<2x128xf32> to vector<1x2x128xf32>
    tpu.vector_store %arg5[%c0_12, %c0_13, %c0_14], %24 {strides = array<i32>} : memref<1x2x128xf32, #tpu.memory_space<vmem>>, vector<1x2x128xf32>,
    return
  }
  func.func @transform_0(%arg0: i32) -> (i32, i32, i32) {
    %c0_i32 = arith.constant 0 : i32
    %c0_i32_0 = arith.constant 0 : i32
    %c0_i32_1 = arith.constant 0 : i32
    return %arg0, %c0_i32, %c0_i32_0 : i32, i32, i32
  }
  func.func @transform_1(%arg0: i32) -> (i32, i32) {
    %c0_i32 = arith.constant 0 : i32
    %c0_i32_0 = arith.constant 0 : i32
    %c0_i32_1 = arith.constant 0 : i32
    return %c0_i32, %c0_i32_0 : i32, i32
  }
  func.func @transform_2(%arg0: i32) -> (i32, i32) {
    %c0_i32 = arith.constant 0 : i32
    %c0_i32_0 = arith.constant 0 : i32
    %c0_i32_1 = arith.constant 0 : i32
    return %c0_i32, %c0_i32_0 : i32, i32
  }
  func.func @transform_3(%arg0: i32) -> (i32, i32, i32) {
    %c0_i32 = arith.constant 0 : i32
    %c0_i32_0 = arith.constant 0 : i32
    %c0_i32_1 = arith.constant 0 : i32
    return %arg0, %c0_i32, %c0_i32_0 : i32, i32, i32
  }
  func.func @transform_4(%arg0: i32) -> (i32, i32, i32) {
    %c0_i32 = arith.constant 0 : i32
    %c0_i32_0 = arith.constant 0 : i32
    %c0_i32_1 = arith.constant 0 : i32
    return %arg0, %c0_i32, %c0_i32_0 : i32, i32, i32
  }
}

module attributes {stable_mosaic.version = 11 : i64} {
  func.func @_conv3x3_kernel(%arg0: i32, %arg1: memref<1x16x128xf32, #tpu.memory_space<vmem>>, %arg2: memref<384x128xf32, #tpu.memory_space<vmem>>, %arg3: memref<1x128xf32, #tpu.memory_space<vmem>>, %arg4: memref<1x128xf32, #tpu.memory_space<vmem>>, %arg5: memref<1x128xf32, #tpu.memory_space<vmem>>, %arg6: memref<1x16x128xf32, #tpu.memory_space<vmem>>, %arg7: memref<1x2x128xf32, #tpu.memory_space<vmem>>) attributes {dimension_semantics = [#tpu.dimension_semantics<parallel>], iteration_bounds = array<i64: 2>, scalar_prefetch = 0 : i64, scratch_operands = 0 : i64, tpu.core_type = #tpu.core_type<tc>, window_params = [{transform_indices = @transform_0, window_bounds = array<i64: 1, 16, 128>}, {pipeline_mode = #tpu.pipeline_mode<synchronous>, transform_indices = @transform_1, window_bounds = array<i64: 384, 128>}, {pipeline_mode = #tpu.pipeline_mode<synchronous>, transform_indices = @transform_2, window_bounds = array<i64: 1, 128>}, {pipeline_mode = #tpu.pipeline_mode<synchronous>, transform_indices = @transform_3, window_bounds = array<i64: 1, 128>}, {pipeline_mode = #tpu.pipeline_mode<synchronous>, transform_indices = @transform_4, window_bounds = array<i64: 1, 128>}, {transform_indices = @transform_5, window_bounds = array<i64: 1, 16, 128>}, {transform_indices = @transform_6, window_bounds = array<i64: 1, 2, 128>}]} {
    %c0 = arith.constant 0 : index
    %c0_0 = arith.constant 0 : index
    %c0_1 = arith.constant 0 : index
    %0 = vector.load %arg1[%c0, %c0_0, %c0_1] : memref<1x16x128xf32, #tpu.memory_space<vmem>>, vector<1x16x128xf32>
    %1 = vector.shape_cast %0 : vector<1x16x128xf32> to vector<16x128xf32>
    %c0_2 = arith.constant 0 : index
    %c0_3 = arith.constant 0 : index
    %2 = vector.load %arg4[%c0_2, %c0_3] : memref<1x128xf32, #tpu.memory_space<vmem>>, vector<1x128xf32>
    %3 = vector.broadcast %2 : vector<1x128xf32> to vector<16x128xf32>
    %4 = arith.mulf %1, %3 : vector<16x128xf32>
    %c0_4 = arith.constant 0 : index
    %c0_5 = arith.constant 0 : index
    %5 = vector.load %arg5[%c0_4, %c0_5] : memref<1x128xf32, #tpu.memory_space<vmem>>, vector<1x128xf32>
    %6 = vector.broadcast %5 : vector<1x128xf32> to vector<16x128xf32>
    %7 = arith.addf %4, %6 : vector<16x128xf32>
    %cst = arith.constant 0.000000e+00 : f32
    %8 = vector.broadcast %cst : f32 to vector<16x128xf32>
    %9 = arith.maximumf %7, %8 : vector<16x128xf32>
    %cst_6 = arith.constant 0.000000e+00 : f32
    %10 = vector.broadcast %cst_6 : f32 to vector<1x128xf32>
    %11 = vector.extract_strided_slice %9 {offsets = [0, 0], sizes = [15, 128], strides = [1, 1]} : vector<16x128xf32> to vector<15x128xf32>
    %12 = tpu.concatenate %10, %11 in 0 : vector<1x128xf32>, vector<15x128xf32> -> vector<16x128xf32>
    %13 = vector.extract_strided_slice %9 {offsets = [1, 0], sizes = [15, 128], strides = [1, 1]} : vector<16x128xf32> to vector<15x128xf32>
    %14 = tpu.concatenate %13, %10 in 0 : vector<15x128xf32>, vector<1x128xf32> -> vector<16x128xf32>
    %15 = tpu.concatenate %12, %9, %14 in 1 : vector<16x128xf32>, vector<16x128xf32>, vector<16x128xf32> -> vector<16x384xf32>
    %c0_7 = arith.constant 0 : index
    %c0_8 = arith.constant 0 : index
    %16 = vector.load %arg2[%c0_7, %c0_8] : memref<384x128xf32, #tpu.memory_space<vmem>>, vector<384x128xf32>
    %cst_9 = arith.constant dense<0.000000e+00> : vector<16x128xf32>
    %17 = tpu.matmul %15, %16, %cst_9 {dimension_numbers = #tpu.dot_dimension_numbers<[1], [0], [0], [1], [0, 0, 1, 1], [], []>} : vector<16x384xf32>, vector<384x128xf32>, vector<16x128xf32> -> vector<16x128xf32>
    %c0_10 = arith.constant 0 : index
    %c0_11 = arith.constant 0 : index
    %18 = vector.load %arg3[%c0_10, %c0_11] : memref<1x128xf32, #tpu.memory_space<vmem>>, vector<1x128xf32>
    %19 = vector.broadcast %18 : vector<1x128xf32> to vector<16x128xf32>
    %20 = arith.addf %17, %19 : vector<16x128xf32>
    %c0_12 = arith.constant 0 : index
    %c0_13 = arith.constant 0 : index
    %c0_14 = arith.constant 0 : index
    %21 = vector.load %arg6[%c0_12, %c0_13, %c0_14] : memref<1x16x128xf32, #tpu.memory_space<vmem>>, vector<1x16x128xf32>
    %22 = vector.shape_cast %21 : vector<1x16x128xf32> to vector<16x128xf32>
    %23 = vector.shape_cast %20 : vector<16x128xf32> to vector<1x16x128xf32>
    tpu.vector_store %arg6[%c0_12, %c0_13, %c0_14], %23 {strides = array<i32>} : memref<1x16x128xf32, #tpu.memory_space<vmem>>, vector<1x16x128xf32>,
    %cst_15 = arith.constant dense<0.000000e+00> : vector<128xf32>
    %24 = vector.multi_reduction <add>, %20, %cst_15 [0] : vector<16x128xf32> to vector<128xf32>
    %25 = vector.shape_cast %24 : vector<128xf32> to vector<1x128xf32>
    %26 = arith.mulf %20, %20 : vector<16x128xf32>
    %cst_16 = arith.constant dense<0.000000e+00> : vector<128xf32>
    %27 = vector.multi_reduction <add>, %26, %cst_16 [0] : vector<16x128xf32> to vector<128xf32>
    %28 = vector.shape_cast %27 : vector<128xf32> to vector<1x128xf32>
    %29 = tpu.concatenate %25, %28 in 0 : vector<1x128xf32>, vector<1x128xf32> -> vector<2x128xf32>
    %c0_17 = arith.constant 0 : index
    %c0_18 = arith.constant 0 : index
    %c0_19 = arith.constant 0 : index
    %30 = vector.load %arg7[%c0_17, %c0_18, %c0_19] : memref<1x2x128xf32, #tpu.memory_space<vmem>>, vector<1x2x128xf32>
    %31 = vector.shape_cast %30 : vector<1x2x128xf32> to vector<2x128xf32>
    %32 = vector.shape_cast %29 : vector<2x128xf32> to vector<1x2x128xf32>
    tpu.vector_store %arg7[%c0_17, %c0_18, %c0_19], %32 {strides = array<i32>} : memref<1x2x128xf32, #tpu.memory_space<vmem>>, vector<1x2x128xf32>,
    return
  }
  func.func @transform_0(%arg0: i32) -> (i32, i32, i32) {
    %c0_i32 = arith.constant 0 : i32
    %c0_i32_0 = arith.constant 0 : i32
    %c0_i32_1 = arith.constant 0 : i32
    return %arg0, %c0_i32, %c0_i32_0 : i32, i32, i32
  }
  func.func @transform_1(%arg0: i32) -> (i32, i32) {
    %c0_i32 = arith.constant 0 : i32
    %c0_i32_0 = arith.constant 0 : i32
    %c0_i32_1 = arith.constant 0 : i32
    return %c0_i32, %c0_i32_0 : i32, i32
  }
  func.func @transform_2(%arg0: i32) -> (i32, i32) {
    %c0_i32 = arith.constant 0 : i32
    %c0_i32_0 = arith.constant 0 : i32
    %c0_i32_1 = arith.constant 0 : i32
    return %c0_i32, %c0_i32_0 : i32, i32
  }
  func.func @transform_3(%arg0: i32) -> (i32, i32) {
    %c0_i32 = arith.constant 0 : i32
    %c0_i32_0 = arith.constant 0 : i32
    %c0_i32_1 = arith.constant 0 : i32
    return %c0_i32, %c0_i32_0 : i32, i32
  }
  func.func @transform_4(%arg0: i32) -> (i32, i32) {
    %c0_i32 = arith.constant 0 : i32
    %c0_i32_0 = arith.constant 0 : i32
    %c0_i32_1 = arith.constant 0 : i32
    return %c0_i32, %c0_i32_0 : i32, i32
  }
  func.func @transform_5(%arg0: i32) -> (i32, i32, i32) {
    %c0_i32 = arith.constant 0 : i32
    %c0_i32_0 = arith.constant 0 : i32
    %c0_i32_1 = arith.constant 0 : i32
    return %arg0, %c0_i32, %c0_i32_0 : i32, i32, i32
  }
  func.func @transform_6(%arg0: i32) -> (i32, i32, i32) {
    %c0_i32 = arith.constant 0 : i32
    %c0_i32_0 = arith.constant 0 : i32
    %c0_i32_1 = arith.constant 0 : i32
    return %arg0, %c0_i32, %c0_i32_0 : i32, i32, i32
  }
}

module attributes {stable_mosaic.version = 11 : i64} {
  func.func @_bn_relu_kernel(%arg0: i32, %arg1: memref<32x128xf32, #tpu.memory_space<vmem>>, %arg2: memref<1x128xf32, #tpu.memory_space<vmem>>, %arg3: memref<1x128xf32, #tpu.memory_space<vmem>>, %arg4: memref<32x128xf32, #tpu.memory_space<vmem>>) attributes {dimension_semantics = [#tpu.dimension_semantics<parallel>], iteration_bounds = array<i64: 1>, scalar_prefetch = 0 : i64, scratch_operands = 0 : i64, tpu.core_type = #tpu.core_type<tc>, window_params = [{pipeline_mode = #tpu.pipeline_mode<synchronous>, transform_indices = @transform_0, window_bounds = array<i64: 32, 128>}, {pipeline_mode = #tpu.pipeline_mode<synchronous>, transform_indices = @transform_1, window_bounds = array<i64: 1, 128>}, {pipeline_mode = #tpu.pipeline_mode<synchronous>, transform_indices = @transform_2, window_bounds = array<i64: 1, 128>}, {pipeline_mode = #tpu.pipeline_mode<synchronous>, transform_indices = @transform_3, window_bounds = array<i64: 32, 128>}]} {
    %c0 = arith.constant 0 : index
    %c0_0 = arith.constant 0 : index
    %0 = vector.load %arg1[%c0, %c0_0] : memref<32x128xf32, #tpu.memory_space<vmem>>, vector<32x128xf32>
    %c0_1 = arith.constant 0 : index
    %c0_2 = arith.constant 0 : index
    %1 = vector.load %arg2[%c0_1, %c0_2] : memref<1x128xf32, #tpu.memory_space<vmem>>, vector<1x128xf32>
    %2 = vector.broadcast %1 : vector<1x128xf32> to vector<32x128xf32>
    %3 = arith.mulf %0, %2 : vector<32x128xf32>
    %c0_3 = arith.constant 0 : index
    %c0_4 = arith.constant 0 : index
    %4 = vector.load %arg3[%c0_3, %c0_4] : memref<1x128xf32, #tpu.memory_space<vmem>>, vector<1x128xf32>
    %5 = vector.broadcast %4 : vector<1x128xf32> to vector<32x128xf32>
    %6 = arith.addf %3, %5 : vector<32x128xf32>
    %cst = arith.constant 0.000000e+00 : f32
    %7 = vector.broadcast %cst : f32 to vector<32x128xf32>
    %8 = arith.maximumf %6, %7 : vector<32x128xf32>
    %c0_5 = arith.constant 0 : index
    %c0_6 = arith.constant 0 : index
    %9 = vector.load %arg4[%c0_5, %c0_6] : memref<32x128xf32, #tpu.memory_space<vmem>>, vector<32x128xf32>
    tpu.vector_store %arg4[%c0_5, %c0_6], %8 {strides = array<i32>} : memref<32x128xf32, #tpu.memory_space<vmem>>, vector<32x128xf32>,
    return
  }
  func.func @transform_0(%arg0: i32) -> (i32, i32) {
    %c0_i32 = arith.constant 0 : i32
    %c0_i32_0 = arith.constant 0 : i32
    %c0_i32_1 = arith.constant 0 : i32
    return %c0_i32, %c0_i32_0 : i32, i32
  }
  func.func @transform_1(%arg0: i32) -> (i32, i32) {
    %c0_i32 = arith.constant 0 : i32
    %c0_i32_0 = arith.constant 0 : i32
    %c0_i32_1 = arith.constant 0 : i32
    return %c0_i32, %c0_i32_0 : i32, i32
  }
  func.func @transform_2(%arg0: i32) -> (i32, i32) {
    %c0_i32 = arith.constant 0 : i32
    %c0_i32_0 = arith.constant 0 : i32
    %c0_i32_1 = arith.constant 0 : i32
    return %c0_i32, %c0_i32_0 : i32, i32
  }
  func.func @transform_3(%arg0: i32) -> (i32, i32) {
    %c0_i32 = arith.constant 0 : i32
    %c0_i32_0 = arith.constant 0 : i32
    %c0_i32_1 = arith.constant 0 : i32
    return %c0_i32, %c0_i32_0 : i32, i32
  }
}

</mosaic_0001>

<bundles_post_ra>
// kernel: tile.33
= control target key start
LH: loop header
LB: loop body
LE: loop exit
PB: predicated region body
PF: predicated region fallthrough
CT: control target
= control target key end

     0   :  { %s28_s0 = inlined_call_operand.vmem [shape: f32[8], index: 0, kind: input, shape index: {}]   ;;  %s29_s1 = inlined_call_operand.vmem [shape: f32[16,8], index: 1, kind: output, shape index: {}]  }
   0x1   :  { %v4_v0 = vld [vmem:[%s28_s0] ss:$0 sm:$0xff] }
   0x2   :  { %5 = vst [vmem:[%s29_s1] sm:$0xff] %v4_v0  ;;  %8 = vst [vmem:[%s29_s1 + $0x8] sm:$0xff] %v4_v0 }

// kernel: tile.34
= control target key start
LH: loop header
LB: loop body
LE: loop exit
PB: predicated region body
PF: predicated region fallthrough
CT: control target
= control target key end

     0   :  { %s131_s10 = smov 120   ;;  %s132_s11 = smov 104   ;;  %vm3_vm0 = vcmask 64512   ;;  %vm9_vm1 = vcmask 1048512   ;;  %vm15_vm2 = vcmask 982912   ;;  %vm21_vm3 = vcmask 917312   ;;  %s207_s0 = inlined_call_operand.vmem [shape: f32[16,8], index: 0, kind: input, shape index: {}]   ;;  %s208_s1 = inlined_call_operand.vmem [shape: f32[1,128], index: 1, kind: output, shape index: {}]  }
   0x1   :  { %v101_v0 = vld [vmem:[%s207_s0 + $0xf] sm:$0x1]   ;;  %v103_v1 = vld [vmem:[%s207_s0 + $0xd] sm:$0x1]   ;;  %v102_v2 = vld [vmem:[%s207_s0 + $0xe] sm:$0x1]  }
   0x2   :  { %7 = vrot.lane.b32.xlu0 %v101_v0, %s131_s10  ;;  %19 = vrot.lane.b32.xlu1 %v103_v1, %s132_s11  ;;  %v104_v3 = vld [vmem:[%s207_s0 + $0xc] sm:$0x1]   ;;  %s133_s16 = smov 112   ;;  %s134_s17 = smov 96   ;;  %v105_v4 = vld [vmem:[%s207_s0 + $0xb] sm:$0x1]  }
   0x3   :  { %v106_v5 = vld [vmem:[%s207_s0 + $0xa] sm:$0x1]   ;;  %v2_v6 = vld [vmem:[%s207_s0] sm:$0x1]   ;;  %s135_s24 = smov 88   ;;  %s136_s25 = smov 80  }
   0x4   :  { %4 = vst.msk [vmem:[#allocation0] sm:$0x1] %vm3_vm0, %v2_v6   ;;  %v107_v7 = vld [vmem:[%s207_s0 + $0x9] sm:$0x1]   ;;  %v108_v8 = vld [vmem:[%s207_s0 + $0x8] sm:$0x1]  }
   0x5   :  { %s137_s30 = smov 72   ;;  %s138_s2 = smov 64   ;;  %v109_v9 = vld [vmem:[%s207_s0 + $0x7] sm:$0x1]   ;;  %v110_v10 = vld [vmem:[%s207_s0 + $0x6] sm:$0x1]  }
   0x6   :  { %13 = vrot.lane.b32.xlu0 %v102_v2, %s133_s16  ;;  %25 = vrot.lane.b32.xlu1 %v104_v3, %s134_s17  ;;  %s139_s7 = smov 56   ;;  %s140_s8 = smov 48   ;;  %v111_v11 = vld [vmem:[%s207_s0 + $0x5] sm:$0x1]   ;;  %v112_v12 = vld [vmem:[%s207_s0 + $0x4] sm:$0x1]  }
   0x7   :  { %s141_s13 = smov 40   ;;  %s142_s14 = smov 32   ;;  %v113_v13 = vld [vmem:[%s207_s0 + $0x3] sm:$0x1]   ;;  %v114_v14 = vld [vmem:[%s207_s0 + $0x2] sm:$0x1]  }
   0x8   :  { %s143_s19 = smov 24   ;;  %s144_s20 = smov 16   ;;  %v115_v15 = vld [vmem:[%s207_s0 + $0x1] sm:$0x1]   ;;  %vm27_vm4 = vcmask 851712   ;;  %vm33_vm5 = vcmask 786112  }
   0x9   :  { %s145_s0 = smov 8   ;;  %vm39_vm6 = vcmask 720512   ;;  %vm45_vm7 = vcmask 654912   ;;  %vm51_vm8 = vcmask 589312   ;;  %vm57_vm9 = vcmask 523712  }
   0xa   :  { %31 = vrot.lane.b32.xlu0 %v105_v4, %s135_s24  ;;  %37 = vrot.lane.b32.xlu1 %v106_v5, %s136_s25  ;;  %vm63_vm10 = vcmask 458112   ;;  %vm69_vm11 = vcmask 392512   ;;  %vm75_vm12 = vcmask 326912   ;;  %vm81_vm13 = vcmask 261312  }
   0xb   :  { %vm87_vm14 = vcmask 195712   ;;  %vm93_vm15 = vcmask 130112  }
   0xe   :  { %43 = vrot.lane.b32.xlu0 %v107_v7, %s137_s30  ;;  %49 = vrot.lane.b32.xlu1 %v108_v8, %s138_s2 }
  0x12   :  { %55 = vrot.lane.b32.xlu0 %v109_v9, %s139_s7  ;;  %61 = vrot.lane.b32.xlu1 %v110_v10, %s140_s8 }
  0x16   :  { %67 = vrot.lane.b32.xlu0 %v111_v11, %s141_s13  ;;  %73 = vrot.lane.b32.xlu1 %v112_v12, %s142_s14 }
  0x1a   :  { %79 = vrot.lane.b32.xlu0 %v113_v13, %s143_s19  ;;  %85 = vrot.lane.b32.xlu1 %v114_v14, %s144_s20 }
  0x1e   :  { %91 = vrot.lane.b32.xlu0 %v115_v15, %s145_s0 }
  0x74   :  { %v8_v16 = vpop.permute.xlu0 %7   ;;  %v20_v17 = vpop.permute.xlu1 %19  }
  0x75   :  { %10 = vst.msk [vmem:[#allocation0] sm:$0x1] %vm9_vm1, %v8_v16  }
  0x78   :  { %v14_v18 = vpop.permute.xlu0 %13   ;;  %v26_v19 = vpop.permute.xlu1 %25  }
  0x79   :  { %16 = vst.msk [vmem:[#allocation0] sm:$0x1] %vm15_vm2, %v14_v18  }
  0x7a   :  { %22 = vst.msk [vmem:[#allocation0] sm:$0x1] %vm21_vm3, %v20_v17  }
  0x7b   :  { %28 = vst.msk [vmem:[#allocation0] sm:$0x1] %vm27_vm4, %v26_v19  }
  0x7c   :  { %v32_v20 = vpop.permute.xlu0 %31   ;;  %v38_v21 = vpop.permute.xlu1 %37  }
  0x7d   :  { %34 = vst.msk [vmem:[#allocation0] sm:$0x1] %vm33_vm5, %v32_v20  }
  0x7e   :  { %40 = vst.msk [vmem:[#allocation0] sm:$0x1] %vm39_vm6, %v38_v21  }
  0x80   :  { %v44_v22 = vpop.permute.xlu0 %43   ;;  %v50_v23 = vpop.permute.xlu1 %49  }
  0x81   :  { %46 = vst.msk [vmem:[#allocation0] sm:$0x1] %vm45_vm7, %v44_v22  }
  0x82   :  { %52 = vst.msk [vmem:[#allocation0] sm:$0x1] %vm51_vm8, %v50_v23  }
  0x84   :  { %v56_v24 = vpop.permute.xlu0 %55   ;;  %v62_v25 = vpop.permute.xlu1 %61  }
  0x85   :  { %58 = vst.msk [vmem:[#allocation0] sm:$0x1] %vm57_vm9, %v56_v24  }
  0x86   :  { %64 = vst.msk [vmem:[#allocation0] sm:$0x1] %vm63_vm10, %v62_v25  }
  0x88   :  { %v68_v26 = vpop.permute.xlu0 %67   ;;  %v74_v27 = vpop.permute.xlu1 %73  }
  0x89   :  { %70 = vst.msk [vmem:[#allocation0] sm:$0x1] %vm69_vm11, %v68_v26  }
  0x8a   :  { %76 = vst.msk [vmem:[#allocation0] sm:$0x1] %vm75_vm12, %v74_v27  }
  0x8c   :  { %v80_v28 = vpop.permute.xlu0 %79   ;;  %v86_v29 = vpop.permute.xlu1 %85  }
  0x8d   :  { %82 = vst.msk [vmem:[#allocation0] sm:$0x1] %vm81_vm13, %v80_v28  }
  0x8e   :  { %88 = vst.msk [vmem:[#allocation0] sm:$0x1] %vm87_vm14, %v86_v29  }
  0x90   :  { %v92_v30 = vpop.permute.xlu0 %91  }
  0x91   :  { %94 = vst.msk [vmem:[#allocation0] sm:$0x1] %vm93_vm15, %v92_v30  }
  0x98   :  { %v98_v31 = vld [vmem:[#allocation0] sm:$0x1] }
  0x99   :  { %100 = vst [vmem:[%s208_s1] sm:$0x1] %v98_v31 }

// kernel: decoder_block_forward.3
= control target key start
LH: loop header
LB: loop body
LE: loop exit
PB: predicated region body
PF: predicated region fallthrough
CT: control target
= control target key end

     0   :  { %s752_s15 = smov 0   ;;  %s942_s0 = inlined_call_operand.vmem [shape: f32[2,16,128], index: 0, kind: input, shape index: {}]   ;;  %s943_s1 = inlined_call_operand.vmem [shape: f32[384,128], index: 1, kind: input, shape index: {}]   ;;  %s944_s2 = inlined_call_operand.vmem [shape: f32[1,128], index: 2, kind: input, shape index: {}]   ;;  %s945_s3 = inlined_call_operand.vmem [shape: f32[2,16,128], index: 3, kind: output, shape index: {0}]   ;;  %s946_s4 = inlined_call_operand.vmem [shape: f32[2,2,128], index: 4, kind: output, shape index: {1}]  }
   0x1 LB: > { %s538_s16 = sadd.s32 4294967295, %s725_s15   ;;  %p542_p0 = scmp.ge.s32.totalorder %s725_s15, 1  ;;  %s725_s15 = sphi %s752_s15, %s15_s15  }
   0x2   : > { %p165_p1 = scmp.lt.s32.totalorder %s725_s15, 3 }
   0x4   : > { %p166_p2 = pnand %p542_p0, %p165_p1 }
   0x5   : > { %v243_v0 = vld [vmem:[%s943_s1 + $0x80] sm:$0xff] (!%p166_p2)  ;;  %v244_v1 = vld [vmem:[%s943_s1 + $0x88] sm:$0xff] (!%p166_p2)  ;;  %v245_v5 = vld [vmem:[%s943_s1 + $0x90] sm:$0xff] (!%p166_p2)  ;;  %p780_p3 = scmp.lt.s32.totalorder (!%p166_p2), %s538_s16, 1  ;;  %vm220_vm0 = vcmask (!%p166_p2), 1046528   ;;  %vm213_vm1 = vcmask (!%p166_p2), 1040384  }
   0x6   : > { %169 = sbr.rel (%p166_p2) target bundleno = 281 (0x119), region = 32  ;;  %v227_v2 = vld [vmem:[%s943_s1] sm:$0xff] (!%p166_p2)  ;;  %v647_v3 = vpack.c.bf16 (!%p166_p2), %v244_v1, %v243_v0  ;;  %v228_v4 = vld [vmem:[%s943_s1 + $0x8] sm:$0xff] (!%p166_p2)  ;;  %v246_v6 = vld [vmem:[%s943_s1 + $0x98] sm:$0xff] (!%p166_p2) }
   0x7   : > { %v649_v7 = vpack.c.bf16 (!%p166_p2), %v228_v4, %v227_v2  ;;  %v651_v8 = vpack.c.bf16 (!%p166_p2), %v246_v6, %v245_v5  ;;  %v259_v9 = vld [vmem:[%s943_s1 + $0x100] sm:$0xff] (!%p166_p2)  ;;  %v260_v10 = vld [vmem:[%s943_s1 + $0x108] sm:$0xff] (!%p166_p2)  ;;  %v229_v11 = vld [vmem:[%s943_s1 + $0x10] sm:$0xff] (!%p166_p2) }
   0x8   : > { %648 = vmatprep.subr.bf16.mxu0 (!%p166_p2), %v647_v3  ;;  %v679_v12 = vpack.c.bf16 (!%p166_p2), %v260_v10, %v259_v9  ;;  %v230_v13 = vld [vmem:[%s943_s1 + $0x18] sm:$0xff] (!%p166_p2)  ;;  %v247_v14 = vld [vmem:[%s943_s1 + $0xa0] sm:$0xff] (!%p166_p2)  ;;  %v248_v15 = vld [vmem:[%s943_s1 + $0xa8] sm:$0xff] (!%p166_p2) }
   0x9   : > { %650 = vmatpush3.bf16.msra.mxu0 (!%p166_p2), %v649_v7  ;;  %v653_v16 = vpack.c.bf16 (!%p166_p2), %v230_v13, %v229_v11  ;;  %v261_v17 = vld [vmem:[%s943_s1 + $0x110] sm:$0xff] (!%p166_p2)  ;;  %v262_v18 = vld [vmem:[%s943_s1 + $0x118] sm:$0xff] (!%p166_p2)  ;;  %v655_v19 = vpack.c.bf16 (!%p166_p2), %v248_v15, %v247_v14  ;;  %v231_v21 = vld [vmem:[%s943_s1 + $0x20] sm:$0xff] (!%p166_p2) }
   0xa   : > { %652 = vmatprep.subr.bf16.mxu0 (!%p166_p2), %v651_v8  ;;  %680 = vmatprep.subr.bf16.mxu1 (!%p166_p2), %v679_v12  ;;  %v683_v20 = vpack.c.bf16 (!%p166_p2), %v262_v18, %v261_v17  ;;  %v232_v22 = vld [vmem:[%s943_s1 + $0x28] sm:$0xff] (!%p166_p2)  ;;  %v249_v23 = vld [vmem:[%s943_s1 + $0xb0] sm:$0xff] (!%p166_p2)  ;;  %v250_v24 = vld [vmem:[%s943_s1 + $0xb8] sm:$0xff] (!%p166_p2) }
   0xb   : > { %682 = vmatpush3.bf16.msra.mxu1 (!%p166_p2), %v679_v12  ;;  %v263_v25 = vld [vmem:[%s943_s1 + $0x120] sm:$0xff] (!%p166_p2)  ;;  %v264_v26 = vld [vmem:[%s943_s1 + $0x128] sm:$0xff] (!%p166_p2)  ;;  %v657_v28 = vpack.c.bf16 (!%p166_p2), %v232_v22, %v231_v21  ;;  %v265_v29 = vld [vmem:[%s943_s1 + $0x130] sm:$0xff] (!%p166_p2)  ;;  %v659_v31 = vpack.c.bf16 (!%p166_p2), %v250_v24, %v249_v23 }
   0xc   : > { %684 = vmatprep.subr.bf16.mxu1 (!%p166_p2), %v683_v20  ;;  %v687_v27 = vpack.c.bf16 (!%p166_p2), %v264_v26, %v263_v25  ;;  %v266_v30 = vld [vmem:[%s943_s1 + $0x138] sm:$0xff] (!%p166_p2)  ;;  %v233_v32 = vld [vmem:[%s943_s1 + $0x30] sm:$0xff] (!%p166_p2)  ;;  %v251_v34 = vld [vmem:[%s943_s1 + $0xc0] sm:$0xff] (!%p166_p2) }
   0xd   : > { %s949_s16 = smov (!%p780_p3, %s538_s16), 1  ;;  %654 = vmatpush3.bf16.msra.mxu0 %v653_v16  ;;  %v234_v33 = vld [vmem:[%s943_s1 + $0x38] sm:$0xff]  ;;  %v252_v35 = vld [vmem:[%s943_s1 + $0xc8] sm:$0xff]  ;;  %v691_v36 = vpack.c.bf16 %v266_v30, %v265_v29  ;;  %v267_v38 = vld [vmem:[%s943_s1 + $0x140] sm:$0xff] }
   0xe   : > { %656 = vmatprep.subr.bf16.mxu0 %v655_v19  ;;  %s554_s18 = sshll.u32 %s949_s16, 4  ;;  %v661_v37 = vpack.c.bf16 %v234_v33, %v233_v32  ;;  %v268_v39 = vld [vmem:[%s943_s1 + $0x148] sm:$0xff]  ;;  %v663_v40 = vpack.c.bf16 %v252_v35, %v251_v34  ;;  %v235_v41 = vld [vmem:[%s943_s1 + $0x40] sm:$0xff]  ;;  %v253_v43 = vld [vmem:[%s943_s1 + $0xd0] sm:$0xff] }
   0xf   : > { %686 = vmatpush3.bf16.msra.mxu1 %v683_v20  ;;  %s199_s30 = scalar_lea.vmem %s942_s0, %s554_s18  ;;  %v236_v42 = vld [vmem:[%s943_s1 + $0x48] sm:$0xff]  ;;  %v254_v44 = vld [vmem:[%s943_s1 + $0xd8] sm:$0xff]  ;;  %v695_v45 = vpack.c.bf16 %v268_v39, %v267_v38  ;;  %v269_v48 = vld [vmem:[%s943_s1 + $0x150] sm:$0xff]  ;;  %s204_s28 = scalar_lea.vmem %s945_s3, %s554_s18 }
  0x10   : > { %688 = vmatprep.subr.bf16.mxu1 %v687_v27  ;;  %v209_v46 = vld [vmem:[%s199_s30] sm:$0xff]  ;;  %v665_v47 = vpack.c.bf16 %v236_v42, %v235_v41  ;;  %v270_v49 = vld [vmem:[%s943_s1 + $0x158] sm:$0xff]  ;;  %v210_v51 = vld [vmem:[%s199_s30 + $0x8] sm:$0xff]  ;;  %v667_v52 = vpack.c.bf16 %v254_v44, %v253_v43  ;;  %s547_s18 = sshll.u32 %s949_s16, 1 }
  0x11   : > { %658 = vmatpush3.bf16.msra.mxu0 %v657_v28  ;;  %v221_v50 = vrot.slane %v209_v46, 1  ;;  %346 = vmatprep.mubr.f32.mxu0 %v209_v46  ;;  %v237_v53 = vld [vmem:[%s943_s1 + $0x50] sm:$0xff]  ;;  %v238_v54 = vld [vmem:[%s943_s1 + $0x58] sm:$0xff]  ;;  %v222_v55 = vrot.slane %v210_v51, 1  ;;  %v255_v56 = vld [vmem:[%s943_s1 + $0xe0] sm:$0xff]  ;;  %v699_v58 = vpack.c.bf16 %v270_v49, %v269_v48  ;;  %v214_v13 = vrot.slane %v209_v46, 7  ;;  %s208_s6 = scalar_lea.vmem %s946_s4, %s547_s18 }
  0x12   : > { %660 = vmatprep.subr.bf16.mxu0 %v659_v31  ;;  %v256_v57 = vld [vmem:[%s943_s1 + $0xe8] sm:$0xff]  ;;  %v669_v60 = vpack.c.bf16 %v238_v54, %v237_v53  ;;  %v271_v61 = vld [vmem:[%s943_s1 + $0x160] sm:$0xff]  ;;  %v257_v2 = vld [vmem:[%s943_s1 + $0xf0] sm:$0xff]  ;;  %v215_v14 = vrot.slane %v210_v51, 7 }
  0x13   : > { %690 = vmatpush3.bf16.msra.mxu1 %v687_v27  ;;  %v223_v59 = vsel %vm220_vm0, %v221_v50, %v222_v55  ;;  %v272_v62 = vld [vmem:[%s943_s1 + $0x168] sm:$0xff]  ;;  %v671_v63 = vpack.c.bf16 %v256_v57, %v255_v56  ;;  %v239_v0 = vld [vmem:[%s943_s1 + $0x60] sm:$0xff]  ;;  %v258_v3 = vld [vmem:[%s943_s1 + $0xf8] sm:$0xff] }
  0x14   : > { %692 = vmatprep.subr.bf16.mxu1 %v691_v36  ;;  %644 = vmatprep.mubr.f32.mxu1 %v223_v59  ;;  %v240_v1 = vld [vmem:[%s943_s1 + $0x68] sm:$0xff]  ;;  %v703_v4 = vpack.c.bf16 %v272_v62, %v271_v61  ;;  %v273_v6 = vld [vmem:[%s943_s1 + $0x170] sm:$0xff]  ;;  %v274_v7 = vld [vmem:[%s943_s1 + $0x178] sm:$0xff]  ;;  %v675_v8 = vpack.c.bf16 %v258_v3, %v257_v2  ;;  %v216_v15 = vsel %vm213_vm1, %v214_v13, %v215_v14 }
  0x15   : > { %662 = vmatpush3.bf16.msra.mxu0 %v661_v37  ;;  %v673_v5 = vpack.c.bf16 %v240_v1, %v239_v0  ;;  %v241_v9 = vld [vmem:[%s943_s1 + $0x70] sm:$0xff]  ;;  %v242_v10 = vld [vmem:[%s943_s1 + $0x78] sm:$0xff]  ;;  %v707_v11 = vpack.c.bf16 %v274_v7, %v273_v6  ;;  %vm549_vm2 = vmneg %vm213_vm1 }
  0x16   : > { %664 = vmatprep.subr.bf16.mxu0 %v663_v40  ;;  %v677_v12 = vpack.c.bf16 %v242_v10, %v241_v9  ;;  %v548_v18 = vld [vmem:[%s944_s2] ss:$0 sm:$0xff] }
  0x17   : > { %694 = vmatpush3.bf16.msra.mxu1 %v691_v36 }
  0x18   : > { %696 = vmatprep.subr.bf16.mxu1 %v695_v45 }
  0x19   : > { %666 = vmatpush3.bf16.msra.mxu0 %v665_v47 }
  0x1a   : > { %668 = vmatprep.subr.bf16.mxu0 %v667_v52 }
  0x1b   : > { %698 = vmatpush3.bf16.msra.mxu1 %v695_v45 }
  0x1c   : > { %700 = vmatprep.subr.bf16.mxu1 %v699_v58 }
  0x1d   : > { %670 = vmatpush3.bf16.msra.mxu0 %v669_v60 }
  0x1e   : > { %672 = vmatprep.subr.bf16.mxu0 %v671_v63 }
  0x1f   : > { %702 = vmatpush3.bf16.msra.mxu1 %v699_v58 }
  0x20   : > { %704 = vmatprep.subr.bf16.mxu1 %v703_v4 }
  0x21   : > { %674 = vmatpush3.bf16.msra.mxu0 %v673_v5 }
  0x22   : > { %676 = vmatprep.subr.bf16.mxu0 %v675_v8 }
  0x23   : > { %706 = vmatpush3.bf16.msra.mxu1 %v703_v4 }
  0x24   : > { %708 = vmatprep.subr.bf16.mxu1 %v707_v11 }
  0x25   : > { %678 = vmatpush3.bf16.msra.mxu0 %v677_v12 }
  0x27   : > { %710 = vmatpush3.bf16.msra.mxu1 %v707_v11 }
  0x28   : > { %550 = vmatmul.mubr.msk.f32.vlgmr.msra.gmra.mrb[0].mxu0 %vm549_vm2, %v214_v13 }
  0x29   : > { %351 = vmatprep.mubr.f32.mxu0 %v210_v51 }
  0x2a   : > { %645 = vmatmul.mubr.msk.f32.vlgmr.msra.gmra.mrb[0].mxu1 %vm220_vm0, %v222_v55 }
  0x2c   : > { %352 = vmatmul.mubr.f32.gmra.mrb[2].mxu0 %v216_v15 }
  0xfb   : > { %v588_v16 = vpop.f32.mrb[0].mxu0 }
  0xfc   : > { %v589_v17 = vpop.f32.mrb[1].mxu0 }
  0xfd   : > { %v590_v19 = vadd.f32 %v589_v17, %v588_v16  ;;  %v646_v20 = vpop.f32.mrb[0].mxu1 }
  0xfe   : > { %v423_v21 = vpop.f32.mrb[1].mxu1 }
  0xff   : > { %v591_v22 = vpop.f32.mrb[2].mxu0  ;;  %v349_v23 = vadd.f32 %v590_v19, %v548_v18 }
 0x100   : > { %v592_v24 = vpop.f32.mrb[3].mxu0 }
 0x101   : > { %v593_v25 = vadd.f32 %v592_v24, %v591_v22  ;;  %v424_v26 = vadd.f32 %v423_v21, %v349_v23 }
 0x103   : > { %v354_v27 = vadd.f32 %v593_v25, %v548_v18  ;;  %432 = vst [vmem:[%s204_s28] sm:$0xff] %v424_v26  ;;  %v441_v30 = vmul.f32 %v424_v26, %v424_v26 }
 0x105   : > { %v429_v28 = vadd.f32 %v646_v20, %v354_v27 }
 0x107   : > { %433 = vst [vmem:[%s204_s28 + $0x8] sm:$0xff] %v429_v28  ;;  %v434_v29 = vadd.f32 %v429_v28, %v424_v26  ;;  %v442_v31 = vmul.f32 %v429_v28, %v429_v28 }
 0x109   : > { %v435_v32 = vrot.slane %v434_v29, 4  ;;  %v443_v33 = vadd.f32 %v442_v31, %v441_v30 }
 0x10b   : > { %v436_v34 = vadd.f32 %v435_v32, %v434_v29  ;;  %v444_v35 = vrot.slane %v443_v33, 4 }
 0x10d   : > { %v437_v36 = vrot.slane %v436_v34, 2  ;;  %v445_v37 = vadd.f32 %v444_v35, %v443_v33 }
 0x10f   : > { %v438_v38 = vadd.f32 %v437_v36, %v436_v34  ;;  %v446_v39 = vrot.slane %v445_v37, 2 }
 0x111   : > { %v439_v40 = vrot.slane %v438_v38, 1  ;;  %v447_v41 = vadd.f32 %v446_v39, %v445_v37 }
 0x113   : > { %v448_v42 = vrot.slane %v447_v41, 1  ;;  %v440_v43 = vadd.f32 %v439_v40, %v438_v38 }
 0x115   : > { %v449_v44 = vadd.f32 %v448_v42, %v447_v41 }
 0x117   : > { %v450_v45 = vsel %vm213_vm1, %v440_v43, %v449_v44 }
 0x118   : > { %451 = vst [vmem:[%s208_s6] sm:$0x3] %v450_v45 }
 0x119 PF: > { %s15_s15 = sadd.s32 1, %s725_s15  }
 0x11a   : > { %p12_p4 = scmp.ge.s32.totalorder %s15_s15, 4  }
 0x11c   :  { %14 = sbr.rel (!%p12_p4) target bundleno = 1 (0x1), region = 74 }

// kernel: decoder_block_forward.5
= control target key start
LH: loop header
LB: loop body
LE: loop exit
PB: predicated region body
PF: predicated region fallthrough
CT: control target
= control target key end

     0   :  { %s104_s0 = inlined_call_operand.vmem [shape: f32[32,128], index: 0, kind: input, shape index: {}]   ;;  %s105_s1 = inlined_call_operand.vmem [shape: f32[1,128], index: 1, kind: input, shape index: {}]   ;;  %s106_s2 = inlined_call_operand.vmem [shape: f32[1,128], index: 2, kind: input, shape index: {}]   ;;  %s107_s3 = inlined_call_operand.vmem [shape: f32[32,128], index: 3, kind: output, shape index: {}]  }
   0x1   :  { %v14_v0 = vld [vmem:[%s104_s0] sm:$0xff]  ;;  %v15_v4 = vld [vmem:[%s104_s0 + $0x8] sm:$0xff]  ;;  %v16_v5 = vld [vmem:[%s104_s0 + $0x10] sm:$0xff] }
   0x2   :  { %v52_v1 = vld [vmem:[%s105_s1] ss:$0 sm:$0xff]  ;;  %v17_v6 = vld [vmem:[%s104_s0 + $0x18] sm:$0xff] }
   0x3   :  { %v53_v2 = vld [vmem:[%s106_s2] ss:$0 sm:$0xff]  ;;  %v25_v3 = vmul.f32 %v52_v1, %v14_v0  ;;  %v26_v7 = vmul.f32 %v52_v1, %v15_v4  ;;  %v27_v8 = vmul.f32 %v52_v1, %v16_v5  ;;  %v28_v9 = vmul.f32 %v52_v1, %v17_v6 }
   0x5   :  { %v36_v10 = vadd.f32 %v53_v2, %v25_v3  ;;  %v37_v11 = vadd.f32 %v53_v2, %v26_v7  ;;  %v38_v12 = vadd.f32 %v53_v2, %v27_v8  ;;  %v39_v13 = vadd.f32 %v53_v2, %v28_v9 }
   0x7   :  { %v40_v14 = vmax.f32 %v36_v10, 0.0  ;;  %v41_v15 = vmax.f32 %v37_v11, 0.0  ;;  %v42_v16 = vmax.f32 %v38_v12, 0.0  ;;  %v43_v17 = vmax.f32 %v39_v13, 0.0 }
   0x9   :  { %44 = vst [vmem:[%s107_s3] sm:$0xff] %v40_v14  ;;  %45 = vst [vmem:[%s107_s3 + $0x8] sm:$0xff] %v41_v15 }
   0xa   :  { %46 = vst [vmem:[%s107_s3 + $0x10] sm:$0xff] %v42_v16  ;;  %47 = vst [vmem:[%s107_s3 + $0x18] sm:$0xff] %v43_v17 }

// kernel: decoder_block_forward.4
= control target key start
LH: loop header
LB: loop body
LE: loop exit
PB: predicated region body
PF: predicated region fallthrough
CT: control target
= control target key end

     0   :  { %s838_s21 = smov 0   ;;  %s1034_s0 = inlined_call_operand.vmem [shape: f32[2,16,128], index: 0, kind: input, shape index: {}]   ;;  %s1035_s1 = inlined_call_operand.vmem [shape: f32[384,128], index: 1, kind: input, shape index: {}]   ;;  %s1036_s2 = inlined_call_operand.vmem [shape: f32[1,128], index: 2, kind: input, shape index: {}]   ;;  %s1037_s3 = inlined_call_operand.vmem [shape: f32[1,128], index: 3, kind: input, shape index: {}]   ;;  %s1038_s4 = inlined_call_operand.vmem [shape: f32[1,128], index: 4, kind: input, shape index: {}]   ;;  %s1039_s5 = inlined_call_operand.vmem [shape: f32[2,16,128], index: 5, kind: output, shape index: {0}]   ;;  %s1040_s6 = inlined_call_operand.vmem [shape: f32[2,2,128], index: 6, kind: output, shape index: {1}]  }
   0x1 LB: > { %s612_s22 = sadd.s32 4294967295, %s801_s21   ;;  %p616_p0 = scmp.ge.s32.totalorder %s801_s21, 1  ;;  %s801_s21 = sphi %s838_s21, %s17_s21  }
   0x2   : > { %p215_p1 = scmp.lt.s32.totalorder %s801_s21, 3 }
   0x4   : > { %p216_p2 = pnand %p616_p0, %p215_p1 }
   0x5   : > { %v317_v0 = vld [vmem:[%s1035_s1 + $0x80] sm:$0xff] (!%p216_p2)  ;;  %v318_v1 = vld [vmem:[%s1035_s1 + $0x88] sm:$0xff] (!%p216_p2)  ;;  %v319_v5 = vld [vmem:[%s1035_s1 + $0x90] sm:$0xff] (!%p216_p2)  ;;  %p866_p3 = scmp.lt.s32.totalorder (!%p216_p2), %s612_s22, 1  ;;  %vm294_vm0 = vcmask (!%p216_p2), 1046528   ;;  %vm287_vm1 = vcmask (!%p216_p2), 1040384  }
   0x6   : > { %219 = sbr.rel (%p216_p2) target bundleno = 281 (0x119), region = 40  ;;  %v301_v2 = vld [vmem:[%s1035_s1] sm:$0xff] (!%p216_p2)  ;;  %v723_v3 = vpack.c.bf16 (!%p216_p2), %v318_v1, %v317_v0  ;;  %v302_v4 = vld [vmem:[%s1035_s1 + $0x8] sm:$0xff] (!%p216_p2)  ;;  %v320_v6 = vld [vmem:[%s1035_s1 + $0x98] sm:$0xff] (!%p216_p2) }
   0x7   : > { %v725_v7 = vpack.c.bf16 (!%p216_p2), %v302_v4, %v301_v2  ;;  %v727_v8 = vpack.c.bf16 (!%p216_p2), %v320_v6, %v319_v5  ;;  %v333_v9 = vld [vmem:[%s1035_s1 + $0x100] sm:$0xff] (!%p216_p2)  ;;  %v334_v10 = vld [vmem:[%s1035_s1 + $0x108] sm:$0xff] (!%p216_p2)  ;;  %v303_v11 = vld [vmem:[%s1035_s1 + $0x10] sm:$0xff] (!%p216_p2) }
   0x8   : > { %724 = vmatprep.subr.bf16.mxu0 (!%p216_p2), %v723_v3  ;;  %v755_v12 = vpack.c.bf16 (!%p216_p2), %v334_v10, %v333_v9  ;;  %v304_v13 = vld [vmem:[%s1035_s1 + $0x18] sm:$0xff] (!%p216_p2)  ;;  %v321_v14 = vld [vmem:[%s1035_s1 + $0xa0] sm:$0xff] (!%p216_p2)  ;;  %v322_v15 = vld [vmem:[%s1035_s1 + $0xa8] sm:$0xff] (!%p216_p2) }
   0x9   : > { %726 = vmatpush3.bf16.msra.mxu0 (!%p216_p2), %v725_v7  ;;  %v729_v16 = vpack.c.bf16 (!%p216_p2), %v304_v13, %v303_v11  ;;  %v335_v17 = vld [vmem:[%s1035_s1 + $0x110] sm:$0xff] (!%p216_p2)  ;;  %v336_v18 = vld [vmem:[%s1035_s1 + $0x118] sm:$0xff] (!%p216_p2)  ;;  %v731_v19 = vpack.c.bf16 (!%p216_p2), %v322_v15, %v321_v14  ;;  %v305_v21 = vld [vmem:[%s1035_s1 + $0x20] sm:$0xff] (!%p216_p2) }
   0xa   : > { %728 = vmatprep.subr.bf16.mxu0 (!%p216_p2), %v727_v8  ;;  %756 = vmatprep.subr.bf16.mxu1 (!%p216_p2), %v755_v12  ;;  %v759_v20 = vpack.c.bf16 (!%p216_p2), %v336_v18, %v335_v17  ;;  %v306_v22 = vld [vmem:[%s1035_s1 + $0x28] sm:$0xff] (!%p216_p2)  ;;  %v323_v23 = vld [vmem:[%s1035_s1 + $0xb0] sm:$0xff] (!%p216_p2)  ;;  %v324_v24 = vld [vmem:[%s1035_s1 + $0xb8] sm:$0xff] (!%p216_p2) }
   0xb   : > { %758 = vmatpush3.bf16.msra.mxu1 (!%p216_p2), %v755_v12  ;;  %v337_v25 = vld [vmem:[%s1035_s1 + $0x120] sm:$0xff] (!%p216_p2)  ;;  %v338_v26 = vld [vmem:[%s1035_s1 + $0x128] sm:$0xff] (!%p216_p2)  ;;  %v733_v28 = vpack.c.bf16 (!%p216_p2), %v306_v22, %v305_v21  ;;  %v339_v29 = vld [vmem:[%s1035_s1 + $0x130] sm:$0xff] (!%p216_p2)  ;;  %v735_v31 = vpack.c.bf16 (!%p216_p2), %v324_v24, %v323_v23 }
   0xc   : > { %760 = vmatprep.subr.bf16.mxu1 (!%p216_p2), %v759_v20  ;;  %v763_v27 = vpack.c.bf16 (!%p216_p2), %v338_v26, %v337_v25  ;;  %v340_v30 = vld [vmem:[%s1035_s1 + $0x138] sm:$0xff] (!%p216_p2)  ;;  %v307_v32 = vld [vmem:[%s1035_s1 + $0x30] sm:$0xff] (!%p216_p2)  ;;  %v325_v34 = vld [vmem:[%s1035_s1 + $0xc0] sm:$0xff] (!%p216_p2) }
   0xd   : > { %s1043_s22 = smov (!%p866_p3, %s612_s22), 1  ;;  %730 = vmatpush3.bf16.msra.mxu0 %v729_v16  ;;  %v308_v33 = vld [vmem:[%s1035_s1 + $0x38] sm:$0xff]  ;;  %v326_v35 = vld [vmem:[%s1035_s1 + $0xc8] sm:$0xff]  ;;  %v767_v36 = vpack.c.bf16 %v340_v30, %v339_v29  ;;  %v341_v38 = vld [vmem:[%s1035_s1 + $0x140] sm:$0xff] }
   0xe   : > { %732 = vmatprep.subr.bf16.mxu0 %v731_v19  ;;  %s630_s28 = sshll.u32 %s1043_s22, 4  ;;  %v737_v37 = vpack.c.bf16 %v308_v33, %v307_v32  ;;  %v342_v39 = vld [vmem:[%s1035_s1 + $0x148] sm:$0xff]  ;;  %v739_v40 = vpack.c.bf16 %v326_v35, %v325_v34  ;;  %v309_v41 = vld [vmem:[%s1035_s1 + $0x40] sm:$0xff]  ;;  %v327_v43 = vld [vmem:[%s1035_s1 + $0xd0] sm:$0xff] }
   0xf   : > { %762 = vmatpush3.bf16.msra.mxu1 %v759_v20  ;;  %s253_s16 = scalar_lea.vmem %s1034_s0, %s630_s28  ;;  %v310_v42 = vld [vmem:[%s1035_s1 + $0x48] sm:$0xff]  ;;  %v328_v44 = vld [vmem:[%s1035_s1 + $0xd8] sm:$0xff]  ;;  %v771_v45 = vpack.c.bf16 %v342_v39, %v341_v38  ;;  %v622_v47 = vld [vmem:[%s1037_s3] ss:$0 sm:$0xff]  ;;  %s258_s24 = scalar_lea.vmem %s1039_s5, %s630_s28 }
  0x10   : > { %764 = vmatprep.subr.bf16.mxu1 %v763_v27  ;;  %v263_v46 = vld [vmem:[%s253_s16] sm:$0xff]  ;;  %v741_v48 = vpack.c.bf16 %v310_v42, %v309_v41  ;;  %v343_v49 = vld [vmem:[%s1035_s1 + $0x150] sm:$0xff]  ;;  %v344_v50 = vld [vmem:[%s1035_s1 + $0x158] sm:$0xff]  ;;  %v743_v53 = vpack.c.bf16 %v328_v44, %v327_v43  ;;  %s621_s28 = sshll.u32 %s1043_s22, 1 }
  0x11   : > { %734 = vmatpush3.bf16.msra.mxu0 %v733_v28  ;;  %v272_v51 = vmul.f32 %v622_v47, %v263_v46  ;;  %v623_v52 = vld [vmem:[%s1038_s4] ss:$0 sm:$0xff]  ;;  %v311_v54 = vld [vmem:[%s1035_s1 + $0x50] sm:$0xff]  ;;  %v312_v55 = vld [vmem:[%s1035_s1 + $0x58] sm:$0xff]  ;;  %v775_v61 = vpack.c.bf16 %v344_v50, %v343_v49  ;;  %s262_s27 = scalar_lea.vmem %s1040_s6, %s621_s28 }
  0x12   : > { %736 = vmatprep.subr.bf16.mxu0 %v735_v31  ;;  %v264_v56 = vld [vmem:[%s253_s16 + $0x8] sm:$0xff]  ;;  %v329_v57 = vld [vmem:[%s1035_s1 + $0xe0] sm:$0xff]  ;;  %v745_v62 = vpack.c.bf16 %v312_v55, %v311_v54  ;;  %v331_v6 = vld [vmem:[%s1035_s1 + $0xf0] sm:$0xff] }
  0x13   : > { %766 = vmatpush3.bf16.msra.mxu1 %v763_v27  ;;  %v330_v58 = vld [vmem:[%s1035_s1 + $0xe8] sm:$0xff]  ;;  %v281_v59 = vadd.f32 %v623_v52, %v272_v51  ;;  %v273_v60 = vmul.f32 %v622_v47, %v264_v56  ;;  %v345_v63 = vld [vmem:[%s1035_s1 + $0x160] sm:$0xff]  ;;  %v332_v7 = vld [vmem:[%s1035_s1 + $0xf8] sm:$0xff] }
  0x14   : > { %768 = vmatprep.subr.bf16.mxu1 %v767_v36  ;;  %v346_v0 = vld [vmem:[%s1035_s1 + $0x168] sm:$0xff]  ;;  %v747_v3 = vpack.c.bf16 %v330_v58, %v329_v57  ;;  %v313_v4 = vld [vmem:[%s1035_s1 + $0x60] sm:$0xff]  ;;  %v347_v12 = vld [vmem:[%s1035_s1 + $0x170] sm:$0xff]  ;;  %v751_v15 = vpack.c.bf16 %v332_v7, %v331_v6 }
  0x15   : > { %738 = vmatpush3.bf16.msra.mxu0 %v737_v37  ;;  %v283_v1 = vmax.f32 %v281_v59, 0.0  ;;  %v282_v2 = vadd.f32 %v623_v52, %v273_v60  ;;  %v314_v5 = vld [vmem:[%s1035_s1 + $0x68] sm:$0xff]  ;;  %v779_v10 = vpack.c.bf16 %v346_v0, %v345_v63  ;;  %v348_v13 = vld [vmem:[%s1035_s1 + $0x178] sm:$0xff]  ;;  %v315_v16 = vld [vmem:[%s1035_s1 + $0x70] sm:$0xff] }
  0x16   : > { %740 = vmatprep.subr.bf16.mxu0 %v739_v40  ;;  %v749_v11 = vpack.c.bf16 %v314_v5, %v313_v4  ;;  %v316_v17 = vld [vmem:[%s1035_s1 + $0x78] sm:$0xff]  ;;  %v783_v19 = vpack.c.bf16 %v348_v13, %v347_v12  ;;  %vm625_vm2 = vmneg %vm287_vm1  ;;  %v624_v26 = vld [vmem:[%s1036_s2] ss:$0 sm:$0xff] }
  0x17   : > { %770 = vmatpush3.bf16.msra.mxu1 %v767_v36  ;;  %420 = vmatprep.mubr.f32.mxu0 %v283_v1  ;;  %v284_v8 = vmax.f32 %v282_v2, 0.0  ;;  %v295_v9 = vrot.slane %v283_v1, 1  ;;  %v753_v20 = vpack.c.bf16 %v316_v17, %v315_v16  ;;  %v288_v21 = vrot.slane %v283_v1, 7 }
  0x18   : > { %772 = vmatprep.subr.bf16.mxu1 %v771_v45 }
  0x19   : > { %742 = vmatpush3.bf16.msra.mxu0 %v741_v48  ;;  %v296_v14 = vrot.slane %v284_v8, 1  ;;  %v289_v22 = vrot.slane %v284_v8, 7 }
  0x1a   : > { %744 = vmatprep.subr.bf16.mxu0 %v743_v53 }
  0x1b   : > { %774 = vmatpush3.bf16.msra.mxu1 %v771_v45  ;;  %v297_v18 = vsel %vm294_vm0, %v295_v9, %v296_v14  ;;  %v290_v23 = vsel %vm287_vm1, %v288_v21, %v289_v22 }
  0x1c   : > { %776 = vmatprep.subr.bf16.mxu1 %v775_v61  ;;  %720 = vmatprep.mubr.f32.mxu1 %v297_v18 }
  0x1d   : > { %746 = vmatpush3.bf16.msra.mxu0 %v745_v62 }
  0x1e   : > { %748 = vmatprep.subr.bf16.mxu0 %v747_v3 }
  0x1f   : > { %778 = vmatpush3.bf16.msra.mxu1 %v775_v61 }
  0x20   : > { %780 = vmatprep.subr.bf16.mxu1 %v779_v10 }
  0x21   : > { %750 = vmatpush3.bf16.msra.mxu0 %v749_v11 }
  0x22   : > { %752 = vmatprep.subr.bf16.mxu0 %v751_v15 }
  0x23   : > { %782 = vmatpush3.bf16.msra.mxu1 %v779_v10 }
  0x24   : > { %784 = vmatprep.subr.bf16.mxu1 %v783_v19 }
  0x25   : > { %754 = vmatpush3.bf16.msra.mxu0 %v753_v20 }
  0x27   : > { %786 = vmatpush3.bf16.msra.mxu1 %v783_v19 }
  0x28   : > { %626 = vmatmul.mubr.msk.f32.vlgmr.msra.gmra.mrb[0].mxu0 %vm625_vm2, %v288_v21 }
  0x29   : > { %425 = vmatprep.mubr.f32.mxu0 %v284_v8 }
  0x2a   : > { %721 = vmatmul.mubr.msk.f32.vlgmr.msra.gmra.mrb[0].mxu1 %vm294_vm0, %v296_v14 }
  0x2c   : > { %426 = vmatmul.mubr.f32.gmra.mrb[2].mxu0 %v290_v23 }
  0xfb   : > { %v664_v24 = vpop.f32.mrb[0].mxu0 }
  0xfc   : > { %v665_v25 = vpop.f32.mrb[1].mxu0 }
  0xfd   : > { %v666_v27 = vadd.f32 %v665_v25, %v664_v24  ;;  %v722_v28 = vpop.f32.mrb[0].mxu1 }
  0xfe   : > { %v497_v29 = vpop.f32.mrb[1].mxu1 }
  0xff   : > { %v667_v30 = vpop.f32.mrb[2].mxu0  ;;  %v423_v31 = vadd.f32 %v666_v27, %v624_v26 }
 0x100   : > { %v668_v32 = vpop.f32.mrb[3].mxu0 }
 0x101   : > { %v669_v33 = vadd.f32 %v668_v32, %v667_v30  ;;  %v498_v34 = vadd.f32 %v497_v29, %v423_v31 }
 0x103   : > { %v428_v35 = vadd.f32 %v669_v33, %v624_v26  ;;  %506 = vst [vmem:[%s258_s24] sm:$0xff] %v498_v34  ;;  %v515_v38 = vmul.f32 %v498_v34, %v498_v34 }
 0x105   : > { %v503_v36 = vadd.f32 %v722_v28, %v428_v35 }
 0x107   : > { %507 = vst [vmem:[%s258_s24 + $0x8] sm:$0xff] %v503_v36  ;;  %v508_v37 = vadd.f32 %v503_v36, %v498_v34  ;;  %v516_v39 = vmul.f32 %v503_v36, %v503_v36 }
 0x109   : > { %v509_v40 = vrot.slane %v508_v37, 4  ;;  %v517_v41 = vadd.f32 %v516_v39, %v515_v38 }
 0x10b   : > { %v510_v42 = vadd.f32 %v509_v40, %v508_v37  ;;  %v518_v43 = vrot.slane %v517_v41, 4 }
 0x10d   : > { %v511_v44 = vrot.slane %v510_v42, 2  ;;  %v519_v45 = vadd.f32 %v518_v43, %v517_v41 }
 0x10f   : > { %v512_v46 = vadd.f32 %v511_v44, %v510_v42  ;;  %v520_v47 = vrot.slane %v519_v45, 2 }
 0x111   : > { %v513_v48 = vrot.slane %v512_v46, 1  ;;  %v521_v49 = vadd.f32 %v520_v47, %v519_v45 }
 0x113   : > { %v522_v50 = vrot.slane %v521_v49, 1  ;;  %v514_v51 = vadd.f32 %v513_v48, %v512_v46 }
 0x115   : > { %v523_v52 = vadd.f32 %v522_v50, %v521_v49 }
 0x117   : > { %v524_v53 = vsel %vm287_vm1, %v514_v51, %v523_v52 }
 0x118   : > { %525 = vst [vmem:[%s262_s27] sm:$0x3] %v524_v53 }
 0x119 PF: > { %s17_s21 = sadd.s32 1, %s801_s21  }
 0x11a   : > { %p14_p4 = scmp.ge.s32.totalorder %s17_s21, 4  }
 0x11c   :  { %16 = sbr.rel (!%p14_p4) target bundleno = 1 (0x1), region = 82 }

</bundles_post_ra>
